<compile_context>
chip_gen: v6e
topology: v6e:2x2x1
jax: 0.10.0
libtpu: 0.0.40
codegen_flags: <defaults>
</compile_context>

<pallas_src>
import functools

import jax
import jax.numpy as jnp
import numpy as np
from jax.experimental import pallas as pl
from jax.experimental.pallas import tpu as pltpu

POS_TILE = 512   # output positions (lanes) per grid step
TXT_CHUNK = 8    # tokens (sublanes) reduced per inner-loop iteration


def _length_regulator_kernel(totals_ref, cum_ref, out_ref, *, pos_tile, txt_chunk):
    """One grid step computes a (B, pos_tile) slab of mel2ph.

    totals_ref: (B, 1)         int32  total frames per batch row
    cum_ref:    (B, T_pad, 1)  int32  cumulative durations (edge-padded)
    out_ref:    (B, pos_tile)  int32
    """
    i = pl.program_id(0)
    b, t_pad, _ = cum_ref.shape
    n_chunks = t_pad // txt_chunk

    # Absolute mel positions covered by this tile           (1, 1, pos_tile).
    pos3 = i * pos_tile + jax.lax.broadcasted_iota(jnp.int32, (1, 1, pos_tile), 2)

    # count[b, t] = sum_j [cumsum[b, j] <= t], reduced over tokens in
    # sublane-sized chunks so no (B, T_txt, P) temporary is ever live.
    def body(c, count):
        start = pl.multiple_of(c * txt_chunk, txt_chunk)
        cum_chunk = cum_ref[:, pl.ds(start, txt_chunk), :]      # (B, C, 1)
        le = (cum_chunk <= pos3).astype(jnp.int32)              # (B, C, P)
        return count + jnp.sum(le, axis=1)                      # (B, P)

    count = jax.lax.fori_loop(
        0, n_chunks, body,
        jnp.zeros((b, pos_tile), jnp.int32),
        unroll=(n_chunks <= 8))

    # mel2ph = 1 + count inside each row's valid range, 0 past it.
    # (Edge-padded cumsum entries equal the row total, so they never count
    #  for valid positions pos < total.)
    pos2 = pos3[:, 0, :]                                        # (1, P)
    out_ref[...] = jnp.where(pos2 < totals_ref[...], count + 1, 0)


def length_regulator(dur, dur_padding=None, alpha=1.0):
    """JAX/Pallas equivalent of LengthRegulator.forward.

    dur:         (B, T_txt) float (or int) durations
    dur_padding: (B, T_txt) optional 0/1 padding mask
    returns:     mel2ph (B, T_speech) int32
    """
    assert alpha > 0
    B, T_txt = dur.shape

    # ---- hoisted preprocessing (round, padding mask, cumsum) -------------
    dur_r = jnp.round(dur.astype(jnp.float32) * jnp.float32(alpha)).astype(jnp.int32)
    if dur_padding is not None:
        dur_r = dur_r * (1 - dur_padding.astype(jnp.int32))
    cum = jnp.cumsum(dur_r, axis=1)                 # (B, T_txt) int32
    totals = cum[:, -1:]                            # (B, 1)

    # T_speech is data-dependent -> one host sync (unavoidable: the original
    # module's output shape depends on the data).
    t_speech = int(jnp.max(totals))

    # Bucket the padded output length to multiples of POS_TILE so distinct
    # utterance lengths hit a small set of cached executables.
    t_pad = pl.cdiv(max(t_speech, 1), POS_TILE) * POS_TILE

    # Pad token axis to a multiple of TXT_CHUNK with edge values (== row
    # total); reshape so the token axis sits on sublanes and the cumsum value
    # broadcasts along lanes without a relayout inside the kernel.
    t_txt_pad = pl.cdiv(T_txt, TXT_CHUNK) * TXT_CHUNK
    cum = jnp.pad(cum, ((0, 0), (0, t_txt_pad - T_txt)), mode="edge")
    cum3 = cum[:, :, None]                          # (B, T_pad, 1)

    kernel = functools.partial(
        _length_regulator_kernel, pos_tile=POS_TILE, txt_chunk=TXT_CHUNK)

    out = pl.pallas_call(
        kernel,
        out_shape=jax.ShapeDtypeStruct((B, t_pad), jnp.int32),
        grid=(t_pad // POS_TILE,),
        in_specs=[
            pl.BlockSpec((B, 1), lambda i: (0, 0)),                 # totals
            pl.BlockSpec((B, t_txt_pad, 1), lambda i: (0, 0, 0)),   # cumsum
        ],
        out_specs=pl.BlockSpec((B, POS_TILE), lambda i: (0, i)),
        compiler_params=pltpu.CompilerParams(
            dimension_semantics=("parallel",)),
    )(totals, cum3)

    return out[:, :t_speech]


def _ref_length_regulator(dur, dur_padding=None, alpha=1.0):
    """NumPy reference mirroring the PyTorch code (float32 rounding, as torch)."""
    dur = np.round(np.asarray(dur, dtype=np.float32) * np.float32(alpha)).astype(np.int64)
    if dur_padding is not None:
        dur = dur * (1 - np.asarray(dur_padding, dtype=np.int64))
    B, T_txt = dur.shape
    token_idx = np.arange(1, T_txt + 1)[None, :, None]
    cum = np.cumsum(dur, axis=1)
    prev = np.concatenate([np.zeros((B, 1), np.int64), cum[:, :-1]], axis=1)
    T = int(dur.sum(-1).max())
    pos = np.arange(T)[None, None]
    mask = (pos >= prev[:, :, None]) & (pos < cum[:, :, None])
    return (token_idx * mask.astype(np.int64)).sum(1)


if __name__ == "__main__":
    key = jax.random.PRNGKey(0)
    k_dur, _ = jax.random.split(key)

    B, T_txt = 2, 8
    # durations 0..5 frames per token, as floats (predictor-style input)
    dur = jax.random.randint(k_dur, (B, T_txt), 0, 6).astype(jnp.float32)
    # pad out the last two tokens of batch element 1
    dur_padding = jnp.zeros((B, T_txt), dtype=jnp.int32)
    dur_padding = dur_padding.at[1, -2:].set(1)

    # case 1: alpha = 1.0, with padding mask
    mel2ph = jax.block_until_ready(length_regulator(dur, dur_padding, alpha=1.0))
    ref = _ref_length_regulator(np.asarray(dur), np.asarray(dur_padding), 1.0)
    np.testing.assert_array_equal(np.asarray(mel2ph, dtype=np.int64), ref)

    # case 2: alpha = 1.5, no padding mask (exercises rounding + None path)
    mel2ph2 = jax.block_until_ready(length_regulator(dur, None, alpha=1.5))
    ref2 = _ref_length_regulator(np.asarray(dur), None, 1.5)
    np.testing.assert_array_equal(np.asarray(mel2ph2, dtype=np.int64), ref2)

    print("KERNEL_OK")
</pallas_src>

<mosaic_0001>
module attributes {stable_mosaic.version = 11 : i64} {
  func.func @_length_regulator_kernel(%arg0: i32, %arg1: memref<2x1xi32, #tpu.memory_space<vmem>>, %arg2: memref<2x8x1xi32, #tpu.memory_space<vmem>>, %arg3: memref<2x512xi32, #tpu.memory_space<vmem>>) attributes {dimension_semantics = [#tpu.dimension_semantics<parallel>], iteration_bounds = array<i64: 1>, scalar_prefetch = 0 : i64, scratch_operands = 0 : i64, tpu.core_type = #tpu.core_type<tc>, window_params = [{pipeline_mode = #tpu.pipeline_mode<synchronous>, transform_indices = @transform_0, window_bounds = array<i64: 2, 1>}, {pipeline_mode = #tpu.pipeline_mode<synchronous>, transform_indices = @transform_1, window_bounds = array<i64: 2, 8, 1>}, {transform_indices = @transform_2, window_bounds = array<i64: 2, 512>}]} {
    %c512_i32 = arith.constant 512 : i32
    %0 = arith.muli %arg0, %c512_i32 : i32
    %1 = tpu.iota {dimensions = array<i32: 2>} : vector<1x1x512xi32>
    %2 = vector.broadcast %0 : i32 to vector<1x1x512xi32>
    %3 = arith.addi %2, %1 : vector<1x1x512xi32>
    %c0_i32 = arith.constant 0 : i32
    %4 = vector.broadcast %c0_i32 : i32 to vector<2x512xi32>
    %c0_i32_0 = arith.constant 0 : i32
    %c8_i32 = arith.constant 8 : i32
    %5 = arith.muli %c0_i32_0, %c8_i32 : i32
    %6 = tpu.assume_multiple %5, 8 : i32
    %c0 = arith.constant 0 : index
    %7 = arith.index_cast %6 : i32 to index
    %c0_1 = arith.constant 0 : index
    %8 = vector.load %arg2[%c0, %7, %c0_1] : memref<2x8x1xi32, #tpu.memory_space<vmem>>, vector<2x8x1xi32>
    %9 = vector.broadcast %8 : vector<2x8x1xi32> to vector<2x8x512xi32>
    %10 = vector.broadcast %3 : vector<1x1x512xi32> to vector<2x8x512xi32>
    %11 = arith.cmpi sle, %9, %10 : vector<2x8x512xi32>
    %12 = arith.extui %11 : vector<2x8x512xi1> to vector<2x8x512xi32>
    %cst = arith.constant dense<0> : vector<2x512xi32>
    %13 = vector.multi_reduction <add>, %12, %cst [1] : vector<2x8x512xi32> to vector<2x512xi32>
    %14 = arith.addi %4, %13 : vector<2x512xi32>
    %c1_i32 = arith.constant 1 : i32
    %15 = vector.shape_cast %3 : vector<1x1x512xi32> to vector<1x512xi32>
    %c0_2 = arith.constant 0 : index
    %c0_3 = arith.constant 0 : index
    %16 = vector.load %arg1[%c0_2, %c0_3] : memref<2x1xi32, #tpu.memory_space<vmem>>, vector<2x1xi32>
    %17 = vector.broadcast %15 : vector<1x512xi32> to vector<2x512xi32>
    %18 = vector.broadcast %16 : vector<2x1xi32> to vector<2x512xi32>
    %19 = arith.cmpi slt, %17, %18 : vector<2x512xi32>
    %c1_i32_4 = arith.constant 1 : i32
    %20 = vector.broadcast %c1_i32_4 : i32 to vector<2x512xi32>
    %21 = arith.addi %14, %20 : vector<2x512xi32>
    %c0_i32_5 = arith.constant 0 : i32
    %22 = vector.broadcast %c0_i32_5 : i32 to vector<2x512xi32>
    %23 = arith.select %19, %21, %22 : vector<2x512xi1>, vector<2x512xi32>
    %c0_6 = arith.constant 0 : index
    %c0_7 = arith.constant 0 : index
    %24 = vector.load %arg3[%c0_6, %c0_7] : memref<2x512xi32, #tpu.memory_space<vmem>>, vector<2x512xi32>
    tpu.vector_store %arg3[%c0_6, %c0_7], %23 {strides = array<i32>} : memref<2x512xi32, #tpu.memory_space<vmem>>, vector<2x512xi32>,
    return
  }
  func.func @transform_0(%arg0: i32) -> (i32, i32) {
    %c0_i32 = arith.constant 0 : i32
    %c0_i32_0 = arith.constant 0 : i32
    %c0_i32_1 = arith.constant 0 : i32
    return %c0_i32, %c0_i32_0 : i32, i32
  }
  func.func @transform_1(%arg0: i32) -> (i32, i32, i32) {
    %c0_i32 = arith.constant 0 : i32
    %c0_i32_0 = arith.constant 0 : i32
    %c0_i32_1 = arith.constant 0 : i32
    %c0_i32_2 = arith.constant 0 : i32
    return %c0_i32, %c0_i32_0, %c0_i32_1 : i32, i32, i32
  }
  func.func @transform_2(%arg0: i32) -> (i32, i32) {
    %c0_i32 = arith.constant 0 : i32
    %c0_i32_0 = arith.constant 0 : i32
    return %c0_i32, %arg0 : i32, i32
  }
}

</mosaic_0001>

<bundles_post_ra>
// kernel: tpu_custom_call.1
= control target key start
LH: loop header
LB: loop body
LE: loop exit
PB: predicated region body
PF: predicated region fallthrough
CT: control target
= control target key end

     0   :  { %v179_v2 = vmov 0   ;;  %s244_s0 = inlined_call_operand.vmem [shape: s32[2,1], index: 0, kind: input, shape index: {}]   ;;  %s245_s1 = inlined_call_operand.vmem [shape: s32[2,8,1], index: 1, kind: input, shape index: {}]   ;;  %s246_s2 = inlined_call_operand.hbm [shape: s32[2,512], index: 2, kind: output, shape index: {}]  }
   0x1   :  { %v23_v0 = vld [vmem:[%s245_s1] sm:$0xff]  ;;  %155 = vset.pattern.permute.xlu0 %v179_v2  ;;  %156 = vset.pattern.permute.xlu1 %v179_v2 }
   0x2   :  { %v95_v1 = vld [vmem:[%s244_s0] sm:$0x3] }
   0x3   :  { %7 = vsyncpa [#allocation3], 0  ;;  %26 = vperm.xlu0 %155, %v23_v0   ;;  %97 = vperm.xlu1 %156, %v95_v1   ;;  %v24_v3 = vld [vmem:[%s245_s1 + $0x8] sm:$0xff]  ;;  %v13_v4 = vlaneseq  ;;  %v180_v39 = vmov 1983009808   ;;  %vm111_vm8 = vcmask 1041409  }
   0x4   :  { %v123_v40 = vunpack.c.l.s4 %v180_v39  ;;  %s181_s0 = smov [#allocation2]  }
   0x5   :  { %v206_v5 = vand.u32 127, %v13_v4  ;;  %v126_v54 = vshrl.u32 %v13_v4, 7  ;;  %s144_s1 = sshll.u32 %s181_s0, 4  ;;  %s145_s1 = int_to_ptr.vmem [resolvable:$true] %s144_s1 }
   0x6   :  { %v124_v53 = vunpack.c.0.s8 %v123_v40  ;;  %s157_s15 = scalar_lea.vmem %s145_s1, 128  ;;  %p162_p1 = scmp.lt.s32.totalorder %s145_s1, %s145_s1 }
   0x7   :  { %29 = vperm.xlu0 %155, %v24_v3   ;;  %v209_v6 = vadd.s32 128, %v206_v5  ;;  %v212_v7 = vadd.s32 256, %v206_v5  ;;  %v215_v8 = vadd.s32 384, %v206_v5  ;;  %p158_p0 = scmp.ne.s32.totalorder %s145_s1, %s157_s15  ;;  %p163_p2 = scmp.lt.s32.totalorder %s157_s15, %s157_s15 }
   0x9   :  { %p164_p3 = por %p163_p2, %p162_p1 }
   0xb   :  { %p165_p4 = pnand %p164_p3, %p158_p0 }
  0x7e   :  { %v27_v9 = vpop.permute.xlu0 %26  ;;  %v98_v59 = vpop.permute.xlu1 %97 }
  0x7f   :  { %vm31_vm0 = vcmp.le.s32.totalorder %v27_v9, %v206_v5  ;;  %vm32_vm1 = vcmp.le.s32.totalorder %v27_v9, %v209_v6  ;;  %vm33_vm2 = vcmp.le.s32.totalorder %v27_v9, %v212_v7  ;;  %vm34_vm3 = vcmp.le.s32.totalorder %v27_v9, %v215_v8 }
  0x80   :  { %v39_v10 = vsel %vm31_vm0, 1, %v179_v2  ;;  %v40_v11 = vsel %vm32_vm1, 1, %v179_v2  ;;  %v41_v12 = vsel %vm33_vm2, 1, %v179_v2  ;;  %v42_v13 = vsel %vm34_vm3, 1, %v179_v2 }
  0x81   :  { %v47_v14 = vrot.slane %v39_v10, 4  ;;  %v53_v15 = vrot.slane %v40_v11, 4  ;;  %v59_v16 = vrot.slane %v41_v12, 4  ;;  %v65_v17 = vrot.slane %v42_v13, 4 }
  0x82   :  { %v30_v18 = vpop.permute.xlu0 %29  ;;  %vm99_vm9 = vcmp.lt.s32.totalorder %v206_v5, %v98_v59  ;;  %vm100_vm10 = vcmp.lt.s32.totalorder %v209_v6, %v98_v59  ;;  %vm101_vm11 = vcmp.lt.s32.totalorder %v212_v7, %v98_v59  ;;  %vm102_vm12 = vcmp.lt.s32.totalorder %v215_v8, %v98_v59 }
  0x83   :  { %v48_v19 = vadd.s32 %v47_v14, %v39_v10  ;;  %v54_v20 = vadd.s32 %v53_v15, %v40_v11  ;;  %v60_v21 = vadd.s32 %v59_v16, %v41_v12  ;;  %v66_v22 = vadd.s32 %v65_v17, %v42_v13 }
  0x84   :  { %vm35_vm4 = vcmp.le.s32.totalorder %v30_v18, %v206_v5  ;;  %vm36_vm5 = vcmp.le.s32.totalorder %v30_v18, %v209_v6  ;;  %vm37_vm6 = vcmp.le.s32.totalorder %v30_v18, %v212_v7  ;;  %vm38_vm7 = vcmp.le.s32.totalorder %v30_v18, %v215_v8 }
  0x85   :  { %v49_v23 = vrot.slane %v48_v19, 2  ;;  %v55_v24 = vrot.slane %v54_v20, 2  ;;  %v61_v25 = vrot.slane %v60_v21, 2  ;;  %v67_v26 = vrot.slane %v66_v22, 2 }
  0x86   :  { %v43_v27 = vsel %vm35_vm4, 1, %v179_v2  ;;  %v44_v28 = vsel %vm36_vm5, 1, %v179_v2  ;;  %v45_v29 = vsel %vm37_vm6, 1, %v179_v2  ;;  %v46_v30 = vsel %vm38_vm7, 1, %v179_v2 }
  0x87   :  { %v50_v31 = vadd.s32 %v49_v23, %v48_v19  ;;  %v56_v32 = vadd.s32 %v55_v24, %v54_v20  ;;  %v62_v33 = vadd.s32 %v61_v25, %v60_v21  ;;  %v68_v34 = vadd.s32 %v67_v26, %v66_v22 }
  0x88   :  { %v71_v35 = vrot.slane %v43_v27, 4  ;;  %v77_v36 = vrot.slane %v44_v28, 4  ;;  %v83_v37 = vrot.slane %v45_v29, 4  ;;  %v89_v38 = vrot.slane %v46_v30, 4 }
  0x89   :  { %v51_v45 = vrot.slane %v50_v31, 1  ;;  %v57_v46 = vrot.slane %v56_v32, 1  ;;  %v63_v47 = vrot.slane %v62_v33, 1  ;;  %v69_v48 = vrot.slane %v68_v34, 1 }
  0x8a   :  { %v72_v41 = vadd.s32 %v71_v35, %v43_v27  ;;  %v78_v42 = vadd.s32 %v77_v36, %v44_v28  ;;  %v84_v43 = vadd.s32 %v83_v37, %v45_v29  ;;  %v90_v44 = vadd.s32 %v89_v38, %v46_v30 }
  0x8b   :  { %v52_v60 = vadd.s32 %v51_v45, %v50_v31  ;;  %v58_v61 = vadd.s32 %v57_v46, %v56_v32  ;;  %v64_v62 = vadd.s32 %v63_v47, %v62_v33  ;;  %v70_v63 = vadd.s32 %v69_v48, %v68_v34 }
  0x8c   :  { %v73_v49 = vrot.slane %v72_v41, 2  ;;  %v79_v50 = vrot.slane %v78_v42, 2  ;;  %v85_v51 = vrot.slane %v84_v43, 2  ;;  %v91_v52 = vrot.slane %v90_v44, 2 }
  0x8d   :  { %v103_v12 = vadd.s32 1, %v52_v60  ;;  %v104_v13 = vadd.s32 1, %v58_v61  ;;  %v105_v14 = vadd.s32 1, %v64_v62  ;;  %v106_v15 = vadd.s32 1, %v70_v63 }
  0x8e   :  { %v74_v55 = vadd.s32 %v73_v49, %v72_v41  ;;  %v80_v56 = vadd.s32 %v79_v50, %v78_v42  ;;  %v86_v57 = vadd.s32 %v85_v51, %v84_v43  ;;  %v92_v58 = vadd.s32 %v91_v52, %v90_v44 }
  0x8f   :  { %v127_v20 = vsub.s32 %v124_v53, %v126_v54 }
  0x90   :  { %v75_v0 = vrot.slane %v74_v55, 1  ;;  %v81_v1 = vrot.slane %v80_v56, 1  ;;  %v87_v2 = vrot.slane %v86_v57, 1  ;;  %v93_v3 = vrot.slane %v92_v58, 1 }
  0x92   :  { %v76_v4 = vadd.s32 %v75_v0, %v74_v55  ;;  %v82_v9 = vadd.s32 %v81_v1, %v80_v56  ;;  %v88_v10 = vadd.s32 %v87_v2, %v86_v57  ;;  %v94_v11 = vadd.s32 %v93_v3, %v92_v58 }
  0x94   :  { %v107_v16 = vadd.s32 1, %v76_v4  ;;  %v108_v17 = vadd.s32 1, %v82_v9  ;;  %v109_v18 = vadd.s32 1, %v88_v10  ;;  %v110_v19 = vadd.s32 1, %v94_v11 }
  0x96   :  { %v112_v21 = vsel %vm111_vm8, %v107_v16, %v103_v12  ;;  %v113_v22 = vsel %vm111_vm8, %v108_v17, %v104_v13  ;;  %v114_v23 = vsel %vm111_vm8, %v109_v18, %v105_v14  ;;  %v115_v24 = vsel %vm111_vm8, %v110_v19, %v106_v15 }
  0x97   :  { %v116_v25 = vsel %vm99_vm9, %v112_v21, 0  ;;  %v117_v26 = vsel %vm100_vm10, %v113_v22, 0  ;;  %v118_v27 = vsel %vm101_vm11, %v114_v23, 0  ;;  %v119_v28 = vsel %vm102_vm12, %v115_v24, 0 }
  0x98   :  { %v120_v29 = vcombine.low %v116_v25, %v117_v26  ;;  %v121_v30 = vcombine.low %v118_v27, %v119_v28 }
  0x9a   :  { %v128_v31 = vrot.slane %v120_v29, %v127_v20  ;;  %v135_v32 = vrot.slane %v121_v30, %v127_v20 }
  0x9c   :  { %v136_v33 = vcombine.low %v128_v31, %v135_v32 }
  0x9e   :  { %137 = vst [vmem:[#allocation2] sm:$0xff] %v136_v33 }
  0x9f   :  { %168 = shalt.err (!%p165_p4)
}
  0xa0   :  { %147 = dma.vmem_to_hbm [thread:$0]  %s145_s1, 128, %s246_s2, [#allocation3]  }
  0xa1   :  { %177 = dma.done.wait [#allocation3], 128  }
  0xa2   :  { %178 = vsyncadd [#allocation3], 4294967168 }
  0xa3   :  { %151 = vsyncpa [#allocation3], 1 }

</bundles_post_ra>
